<compile_context>
chip_gen: v6e
topology: v6e:2x2x1
jax: 0.10.0
libtpu: 0.0.40
codegen_flags: <defaults>
</compile_context>

<pallas_src>
import jax
import jax.numpy as jnp
import numpy as np
from jax.experimental import pallas as pl
from jax.experimental.pallas import tpu as pltpu


def _round_up(x, m):
    return ((x + m - 1) // m) * m


# ---------------- Pallas kernel ----------------

def _mlp_fused_kernel(scal_ref, x_ref, w3e_ref, b3e_ref, w4p_ref, b4p_ref, o_ref):
    """Fused forward for one batch tile.

    scal_ref: SMEM (2,)  f32        -- [w1, b1] of Linear(1, 1)
    x_ref:    VMEM (tm, L) f32      -- batch tile, vector_length on lanes
    w3e_ref:  VMEM (L, dim) bf16    -- folded Linear(1,d_model) ∘ Linear(L*d_model,dim)
    b3e_ref:  VMEM (1, dim) f32     -- folded bias
    w4p_ref:  VMEM (dim, dim_pad) bf16 -- W4^T zero-padded to a 128-lane multiple
    b4p_ref:  VMEM (1, dim_pad) f32
    o_ref:    VMEM (tm, dim_pad) f32   -- lane-dense output slab
    """
    w1 = scal_ref[0]
    b1 = scal_ref[1]

    # Stage 1: Linear(1,1) + ReLU  -> pure VPU elementwise (no K=1 MXU work).
    h = jnp.maximum(x_ref[...] * w1 + b1, 0.0)                        # (tm, L) f32

    # Stage 2: folded Linear(L, dim) on the MXU, bf16 operands, f32 accumulate.
    z = jnp.dot(h.astype(jnp.bfloat16), w3e_ref[...],
                preferred_element_type=jnp.float32) + b3e_ref[...]    # (tm, dim)
    z = jnp.maximum(z, 0.0)

    # Stage 3: Linear(dim, dim), output padded to a lane-dense 128-wide slab.
    y = jnp.dot(z.astype(jnp.bfloat16), w4p_ref[...],
                preferred_element_type=jnp.float32) + b4p_ref[...]    # (tm, dim_pad)
    o_ref[...] = y.astype(o_ref.dtype)


# ---------------- Python wrapper ----------------

def init_params(key, vector_length, d_model, dim, input_dim=1):
    """Deterministic PyTorch-Linear-shaped parameters (W: (out, in), b: (out,))."""
    ks = jax.random.split(key, 8)

    def lin(kw, kb, fan_in, fan_out):
        bound = 1.0 / np.sqrt(fan_in)
        w = jax.random.uniform(kw, (fan_out, fan_in), jnp.float32, -bound, bound)
        b = jax.random.uniform(kb, (fan_out,), jnp.float32, -bound, bound)
        return w, b

    w1, b1 = lin(ks[0], ks[1], input_dim, input_dim)
    w2, b2 = lin(ks[2], ks[3], input_dim, d_model)
    w3, b3 = lin(ks[4], ks[5], d_model * vector_length, dim)
    w4, b4 = lin(ks[6], ks[7], dim, dim)
    return dict(w1=w1, b1=b1, w2=w2, b2=b2, w3=w3, b3=b3, w4=w4, b4=b4)


def mlp_forward(x, params, vector_length, d_model, dim, input_dim=1):
    # TODO(synk): only the module-default input_dim == 1 path is implemented;
    # general input_dim would need a per-position K=input_dim matmul for layer 1.
    assert input_dim == 1

    if x.ndim >= 3:                       # mirror `if len(x.shape) < 3: unsqueeze(-1)`
        x = x[..., 0]                     # (B, L, 1) -> (B, L)
    x = x.astype(jnp.float32)
    B, L = x.shape
    assert L == vector_length

    # ---- weight prep (glue; operates on constants only, never on activations) ----
    w1s = params["w1"].reshape(()).astype(jnp.float32)          # Linear(1,1) scalar
    b1s = params["b1"].reshape(()).astype(jnp.float32)
    scal = jnp.stack([w1s, b1s])                                 # (2,) -> SMEM

    w2col = params["w2"][:, 0].astype(jnp.float32)               # (d_model,)
    b2 = params["b2"].astype(jnp.float32)                        # (d_model,)
    w3t = params["w3"].T.astype(jnp.float32)                     # (L*d_model, dim)
    w3r = w3t.reshape(L, d_model, dim)
    # Fold Linear(1, d_model) ∘ flatten into Linear(L*d_model, dim):
    #   flat[:, l*dm + j] = h[:, l] * w2col[j] + b2[j]
    #   flat @ W3^T       = h @ W3_eff + b3_fold
    w3_eff = jnp.einsum("j,ljo->lo", w2col, w3r)                 # (L, dim)
    b3_eff = params["b3"].astype(jnp.float32) + jnp.einsum("j,ljo->o", b2, w3r)

    dim_pad = _round_up(dim, 128)                                # lane-dense output
    w4t = params["w4"].T.astype(jnp.float32)                     # (dim, dim)
    w4t_pad = jnp.zeros((dim, dim_pad), jnp.float32).at[:, :dim].set(w4t)
    b4_pad = jnp.zeros((dim_pad,), jnp.float32).at[:dim].set(
        params["b4"].astype(jnp.float32))

    w3e_bf = w3_eff.astype(jnp.bfloat16)                         # MXU operands in bf16
    w4p_bf = w4t_pad.astype(jnp.bfloat16)
    b3_row = b3_eff[None, :]                                     # f32 biases (post-acc)
    b4_row = b4_pad[None, :]

    # ---- batch tiling: big tiles amortize per-grid-step overhead; "parallel"
    #      axis lets v6e megacore / v7x 2-TC shard the batch. VMEM per tile is
    #      tiny (<1 MiB) so no special vmem budget is needed on v7x's 64 MiB. ----
    tm = min(512, _round_up(B, 8))
    B_pad = _round_up(B, tm)
    if B_pad != B:
        x = jnp.pad(x, ((0, B_pad - B), (0, 0)))
    grid = (B_pad // tm,)

    out_pad = pl.pallas_call(
        _mlp_fused_kernel,
        out_shape=jax.ShapeDtypeStruct((B_pad, dim_pad), jnp.float32),
        grid=grid,
        in_specs=[
            pl.BlockSpec(memory_space=pltpu.MemorySpace.SMEM),     # [w1, b1] scalars
            pl.BlockSpec((tm, L), lambda i: (i, 0)),               # x batch tile
            pl.BlockSpec((L, dim), lambda i: (0, 0)),              # W3_eff (resident)
            pl.BlockSpec((1, dim), lambda i: (0, 0)),              # b3_eff
            pl.BlockSpec((dim, dim_pad), lambda i: (0, 0)),        # W4^T (padded)
            pl.BlockSpec((1, dim_pad), lambda i: (0, 0)),          # b4 (padded)
        ],
        out_specs=pl.BlockSpec((tm, dim_pad), lambda i: (i, 0)),
        compiler_params=pltpu.CompilerParams(
            dimension_semantics=("parallel",),
            vmem_limit_bytes=32 * 1024 * 1024,                     # safe on v5e/v6e/v7x
        ),
        cost_estimate=pl.CostEstimate(
            flops=2 * B_pad * (L * dim + dim * dim_pad) + 3 * B_pad * L,
            transcendentals=0,
            bytes_accessed=(B_pad * L * 4 + L * dim * 2 + dim * 4
                            + dim * dim_pad * 2 + dim_pad * 4
                            + B_pad * dim_pad * 4),
        ),
    )(scal, x, w3e_bf, b3_row, w4p_bf, b4_row)

    return out_pad[:B, :dim]


def mlp_reference(x, params):
    """Pure-JAX f32 reference mirroring the PyTorch forward."""
    if x.ndim < 3:
        x = x[..., None]
    h = jnp.maximum(x @ params["w1"].T + params["b1"], 0.0)
    h = h @ params["w2"].T + params["b2"]
    flat = h.reshape(h.shape[0], -1)
    z = jnp.maximum(flat @ params["w3"].T + params["b3"], 0.0)
    return z @ params["w4"].T + params["b4"]


if __name__ == "__main__":
    B = 2
    vector_length = 8
    d_model = 16
    dim = 32
    input_dim = 1

    key = jax.random.PRNGKey(0)
    kx, kp = jax.random.split(key)
    x = jax.random.normal(kx, (B, vector_length), jnp.float32)
    params = init_params(kp, vector_length, d_model, dim, input_dim)

    out = mlp_forward(x, params, vector_length, d_model, dim, input_dim)
    out = jax.block_until_ready(out)

    ref = mlp_reference(x, params)
    assert out.shape == (B, dim)
    # bf16 matmul operands (f32 accumulation) vs the pure-f32 reference -> loosened tol.
    np.testing.assert_allclose(np.asarray(out), np.asarray(ref), rtol=3e-2, atol=3e-2)

    print("KERNEL_OK")
</pallas_src>

<mosaic_0001>
module attributes {stable_mosaic.version = 11 : i64} {
  func.func @_mlp_fused_kernel(%arg0: i32, %arg1: memref<2xf32, #tpu.memory_space<smem>>, %arg2: memref<8x8xf32, #tpu.memory_space<vmem>>, %arg3: memref<8x32xbf16, #tpu.memory_space<vmem>>, %arg4: memref<1x32xf32, #tpu.memory_space<vmem>>, %arg5: memref<32x128xbf16, #tpu.memory_space<vmem>>, %arg6: memref<1x128xf32, #tpu.memory_space<vmem>>, %arg7: memref<8x128xf32, #tpu.memory_space<vmem>>) attributes {dimension_semantics = [#tpu.dimension_semantics<parallel>], iteration_bounds = array<i64: 1>, scalar_prefetch = 0 : i64, scratch_operands = 0 : i64, tpu.core_type = #tpu.core_type<tc>, window_params = [{transform_indices = @transform_0, window_bounds = array<i64: 2>}, {transform_indices = @transform_1, window_bounds = array<i64: 8, 8>}, {pipeline_mode = #tpu.pipeline_mode<synchronous>, transform_indices = @transform_2, window_bounds = array<i64: 8, 32>}, {pipeline_mode = #tpu.pipeline_mode<synchronous>, transform_indices = @transform_3, window_bounds = array<i64: 1, 32>}, {pipeline_mode = #tpu.pipeline_mode<synchronous>, transform_indices = @transform_4, window_bounds = array<i64: 32, 128>}, {pipeline_mode = #tpu.pipeline_mode<synchronous>, transform_indices = @transform_5, window_bounds = array<i64: 1, 128>}, {transform_indices = @transform_6, window_bounds = array<i64: 8, 128>}]} {
    %c0 = arith.constant 0 : index
    %0 = memref.load %arg1[%c0] : memref<2xf32, #tpu.memory_space<smem>>
    %c1 = arith.constant 1 : index
    %1 = memref.load %arg1[%c1] : memref<2xf32, #tpu.memory_space<smem>>
    %c0_0 = arith.constant 0 : index
    %c0_1 = arith.constant 0 : index
    %2 = vector.load %arg2[%c0_0, %c0_1] : memref<8x8xf32, #tpu.memory_space<vmem>>, vector<8x8xf32>
    %3 = vector.broadcast %0 : f32 to vector<8x8xf32>
    %4 = arith.mulf %2, %3 : vector<8x8xf32>
    %5 = vector.broadcast %1 : f32 to vector<8x8xf32>
    %6 = arith.addf %4, %5 : vector<8x8xf32>
    %cst = arith.constant 0.000000e+00 : f32
    %7 = vector.broadcast %cst : f32 to vector<8x8xf32>
    %8 = arith.maximumf %6, %7 : vector<8x8xf32>
    %9 = arith.truncf %8 : vector<8x8xf32> to vector<8x8xbf16>
    %c0_2 = arith.constant 0 : index
    %c0_3 = arith.constant 0 : index
    %10 = vector.load %arg3[%c0_2, %c0_3] : memref<8x32xbf16, #tpu.memory_space<vmem>>, vector<8x32xbf16>
    %cst_4 = arith.constant dense<0.000000e+00> : vector<8x32xf32>
    %11 = tpu.matmul %9, %10, %cst_4 {dimension_numbers = #tpu.dot_dimension_numbers<[1], [0], [0], [1], [0, 0, 1, 1], [], []>} : vector<8x8xbf16>, vector<8x32xbf16>, vector<8x32xf32> -> vector<8x32xf32>
    %c0_5 = arith.constant 0 : index
    %c0_6 = arith.constant 0 : index
    %12 = vector.load %arg4[%c0_5, %c0_6] : memref<1x32xf32, #tpu.memory_space<vmem>>, vector<1x32xf32>
    %13 = vector.broadcast %12 : vector<1x32xf32> to vector<8x32xf32>
    %14 = arith.addf %11, %13 : vector<8x32xf32>
    %cst_7 = arith.constant 0.000000e+00 : f32
    %15 = vector.broadcast %cst_7 : f32 to vector<8x32xf32>
    %16 = arith.maximumf %14, %15 : vector<8x32xf32>
    %17 = arith.truncf %16 : vector<8x32xf32> to vector<8x32xbf16>
    %c0_8 = arith.constant 0 : index
    %c0_9 = arith.constant 0 : index
    %18 = vector.load %arg5[%c0_8, %c0_9] : memref<32x128xbf16, #tpu.memory_space<vmem>>, vector<32x128xbf16>
    %cst_10 = arith.constant dense<0.000000e+00> : vector<8x128xf32>
    %19 = tpu.matmul %17, %18, %cst_10 {dimension_numbers = #tpu.dot_dimension_numbers<[1], [0], [0], [1], [0, 0, 1, 1], [], []>} : vector<8x32xbf16>, vector<32x128xbf16>, vector<8x128xf32> -> vector<8x128xf32>
    %c0_11 = arith.constant 0 : index
    %c0_12 = arith.constant 0 : index
    %20 = vector.load %arg6[%c0_11, %c0_12] : memref<1x128xf32, #tpu.memory_space<vmem>>, vector<1x128xf32>
    %21 = vector.broadcast %20 : vector<1x128xf32> to vector<8x128xf32>
    %22 = arith.addf %19, %21 : vector<8x128xf32>
    %c0_13 = arith.constant 0 : index
    %c0_14 = arith.constant 0 : index
    %23 = vector.load %arg7[%c0_13, %c0_14] : memref<8x128xf32, #tpu.memory_space<vmem>>, vector<8x128xf32>
    tpu.vector_store %arg7[%c0_13, %c0_14], %22 {strides = array<i32>} : memref<8x128xf32, #tpu.memory_space<vmem>>, vector<8x128xf32>,
    return
  }
  func.func @transform_0(%arg0: i32) -> i32 {
    %c0_i32 = arith.constant 0 : i32
    %c0_i32_0 = arith.constant 0 : i32
    return %c0_i32 : i32
  }
  func.func @transform_1(%arg0: i32) -> (i32, i32) {
    %c0_i32 = arith.constant 0 : i32
    %c0_i32_0 = arith.constant 0 : i32
    return %arg0, %c0_i32 : i32, i32
  }
  func.func @transform_2(%arg0: i32) -> (i32, i32) {
    %c0_i32 = arith.constant 0 : i32
    %c0_i32_0 = arith.constant 0 : i32
    %c0_i32_1 = arith.constant 0 : i32
    return %c0_i32, %c0_i32_0 : i32, i32
  }
  func.func @transform_3(%arg0: i32) -> (i32, i32) {
    %c0_i32 = arith.constant 0 : i32
    %c0_i32_0 = arith.constant 0 : i32
    %c0_i32_1 = arith.constant 0 : i32
    return %c0_i32, %c0_i32_0 : i32, i32
  }
  func.func @transform_4(%arg0: i32) -> (i32, i32) {
    %c0_i32 = arith.constant 0 : i32
    %c0_i32_0 = arith.constant 0 : i32
    %c0_i32_1 = arith.constant 0 : i32
    return %c0_i32, %c0_i32_0 : i32, i32
  }
  func.func @transform_5(%arg0: i32) -> (i32, i32) {
    %c0_i32 = arith.constant 0 : i32
    %c0_i32_0 = arith.constant 0 : i32
    %c0_i32_1 = arith.constant 0 : i32
    return %c0_i32, %c0_i32_0 : i32, i32
  }
  func.func @transform_6(%arg0: i32) -> (i32, i32) {
    %c0_i32 = arith.constant 0 : i32
    %c0_i32_0 = arith.constant 0 : i32
    return %arg0, %c0_i32 : i32, i32
  }
}

</mosaic_0001>

<bundles_post_ra>
// kernel: tpu_custom_call.1
= control target key start
LH: loop header
LB: loop body
LE: loop exit
PB: predicated region body
PF: predicated region fallthrough
CT: control target
= control target key end

     0   :  { %11 = vsyncpa [#allocation5], 0  ;;  %s423_s0 = inlined_call_operand.hbm [shape: f32[2], index: 0, kind: input, shape index: {}]   ;;  %s424_s1 = inlined_call_operand.hbm [shape: f32[8,8], index: 1, kind: input, shape index: {}]   ;;  %s425_s2 = inlined_call_operand.hbm [shape: bf16[8,32], index: 2, kind: input, shape index: {}]   ;;  %s426_s3 = inlined_call_operand.vmem [shape: f32[1,32], index: 3, kind: input, shape index: {}]   ;;  %s427_s4 = inlined_call_operand.hbm [shape: bf16[32,128], index: 4, kind: input, shape index: {}]   ;;  %s428_s5 = inlined_call_operand.vmem [shape: f32[1,128], index: 5, kind: input, shape index: {}]   ;;  %s429_s6 = inlined_call_operand.hbm [shape: f32[8,128], index: 6, kind: output, shape index: {}]  }
   0x1   :  { %12 = vsyncpa [#allocation3], 0 }
   0x2   :  { %13 = vsyncpa [#allocation8], 0 }
   0x3   :  { %14 = vsyncpa [#allocation4], 0  ;;  %s358_s21 = smov [#allocation7]   ;;  %s359_s23 = smov [#allocation6]  }
   0x4   :  { %s39_s22 = sshll.u32 %s358_s21, 4  ;;  %s29_s24 = sshll.u32 %s359_s23, 4  ;;  %s40_s22 = int_to_ptr.vmem [resolvable:$true] %s39_s22  ;;  %s30_s24 = int_to_ptr.vmem [resolvable:$true] %s29_s24 }
   0x5   :  { %s270_s25 = scalar_lea.vmem %s40_s22, 64  ;;  %p275_p1 = scmp.lt.s32.totalorder %s40_s22, %s40_s22 }
   0x6   :  { %p271_p0 = scmp.ne.s32.totalorder %s40_s22, %s270_s25  ;;  %p276_p2 = scmp.lt.s32.totalorder %s270_s25, %s270_s25 }
   0x8   :  { %p277_p3 = por %p276_p2, %p275_p1 }
   0xa   :  { %p278_p4 = pnand %p277_p3, %p271_p0 }
   0xc   :  { %281 = shalt.err (!%p278_p4)
}
   0xd   :  { %42 = dma.hbm_to_vmem [thread:$0]  %s425_s2, 64, %s40_s22, [#allocation8]  }
   0xe   :  { %s360_s28 = smov [#allocation2]   ;;  %s298_s7 = scalar_lea.vmem %s30_s24, 128 }
   0xf   :  { %22 = dma.hbm_to_smem %s423_s0, 16, %s360_s28, [#allocation5]  }
  0x10   :  { %p299_p5 = scmp.ne.s32.totalorder %s30_s24, %s298_s7  ;;  %p303_p6 = scmp.lt.s32.totalorder %s30_s24, %s30_s24 }
  0x11   :  { %p304_p7 = scmp.lt.s32.totalorder %s298_s7, %s298_s7 }
  0x13   :  { %p305_p8 = por %p304_p7, %p303_p6 }
  0x15   :  { %p306_p9 = pnand %p305_p8, %p299_p5 }
  0x17   :  { %309 = shalt.err (!%p306_p9)
}
  0x18   :  { %32 = dma.hbm_to_vmem [thread:$0]  %s424_s1, 128, %s30_s24, [#allocation3]  }
  0x19   :  { %s361_s10 = smov [#allocation9]  }
  0x1a   :  { %s50_s11 = sshll.u32 %s361_s10, 4  ;;  %s51_s11 = int_to_ptr.vmem [resolvable:$true] %s50_s11 }
  0x1b   :  { %s318_s2 = scalar_lea.vmem %s51_s11, 256  ;;  %p323_p11 = scmp.lt.s32.totalorder %s51_s11, %s51_s11 }
  0x1c   :  { %p319_p10 = scmp.ne.s32.totalorder %s51_s11, %s318_s2  ;;  %p324_p12 = scmp.lt.s32.totalorder %s318_s2, %s318_s2 }
  0x1e   :  { %p325_p13 = por %p324_p12, %p323_p11 }
  0x20   :  { %p326_p0 = pnand %p325_p13, %p319_p10 }
  0x22   :  { %329 = shalt.err (!%p326_p0)
}
  0x23   :  { %s362_s0 = smov 64   ;;  %s363_s12 = smov 4  }
  0x24   :  { %56 = dma.hbm_to_vmem [thread:$0]  %s427_s4, 256, %s51_s11, [#allocation8], %s362_s0, %s362_s0, %s363_s12  }
  0x25   :  { %350 = dma.done.wait [#allocation5], 16  }
  0x26   :  { %351 = vsyncadd [#allocation5], 4294967280 }
  0x27   :  { %352 = dma.done.wait [#allocation3], 128  }
  0x28   :  { %353 = vsyncadd [#allocation3], 4294967168 }
  0x29   :  { %354 = dma.done.wait [#allocation8], 320  }
  0x2a   :  { %355 = vsyncadd [#allocation8], 4294966976 }
  0x2b   :  { %71 = sfence }
  0x2c   :  { %v82_v0 = vld [vmem:[#allocation7] sm:$0xf]  ;;  %vm94_vm0 = vcmask 1043456   ;;  %v364_v1 = vmov 0.0   ;;  %vm365_vm1 = vmmov 0   ;;  %s73_s1 = sld [smem:[#allocation2]] }
  0x2d   :  { %237 = vmatprep.subr.bf16.mxu0 %v364_v1  ;;  %v96_v2 = vsel %vm94_vm0, %v82_v0, 0  ;;  %239 = vmatprep.mubr.msk.bf16.mxu0 %vm365_vm1, %v364_v1  ;;  %s225_s15 = sld [smem:[#allocation2 + $0x1]]  ;;  %v75_v3 = vld [vmem:[#allocation6] sm:$0xff]  ;;  %vm90_vm2 = vcmask 64512   ;;  %v260_v10 = vld [vmem:[#allocation9 + $0x8] sm:$0xff]   ;;  %v261_v11 = vld [vmem:[#allocation9] sm:$0xff]  }
  0x2e   :  { %238 = vmatpush3.bf16.msra.mxu0 %v96_v2  ;;  %243 = vmatprep.subr.bf16.mxu1 %v364_v1  ;;  %v226_v12 = vld [vmem:[%s426_s3] ss:$0 sm:$0xff]  ;;  %vm163_vm3 = vcmask 261120   ;;  %s366_s19 = smov [#allocation10]  }
  0x2f   :  { %247 = vmatprep.mubr.msk.bf16.mxu1 %vm365_vm1, %v364_v1  ;;  %244 = vmatpush3.bf16.msra.mxu1 %v260_v10  ;;  %v228_v20 = vld [vmem:[%s428_s5] ss:$0 sm:$0xff]  ;;  %s214_s20 = sshll.u32 %s366_s19, 4  ;;  %s215_s20 = int_to_ptr.vmem [resolvable:$true] %s214_s20 }
  0x30   :  { %245 = vmatprep.subr.bf16.mxu1 %v364_v1  ;;  %s330_s3 = scalar_lea.vmem %s215_s20, 128  ;;  %p335_p2 = scmp.lt.s32.totalorder %s215_s20, %s215_s20 }
  0x31   :  { %p331_p1 = scmp.ne.s32.totalorder %s215_s20, %s330_s3  ;;  %p336_p3 = scmp.lt.s32.totalorder %s330_s3, %s330_s3 }
  0x32   :  { %v76_v4 = vstv %s73_s1 }
  0x33   :  { %v77_v5 = vmul.f32 %v76_v4, %v75_v3  ;;  %v78_v6 = vstv %s225_s15  ;;  %246 = vmatpush3.bf16.msra.mxu1 %v261_v11  ;;  %p337_p4 = por %p336_p3, %p335_p2 }
  0x35   :  { %v79_v7 = vadd.f32 %v78_v6, %v77_v5  ;;  %p338_p5 = pnand %p337_p4, %p331_p1 }
  0x37   :  { %v80_v8 = vmax.f32 %v79_v7, 0.0 }
  0x39   :  { %v81_v9 = vpack.c.bf16 %v80_v8, %v80_v8 }
  0x3b   :  { %240 = vmatmul.mubr.msk.bf16.vlgmr.msra.gmra.mxu0 %vm90_vm2, %v81_v9 }
  0xfb   :  { %v132_v13 = vpop.f32.mrf.mxu0 }
  0xfc   :  { %v133_v14 = vadd.f32 %v226_v12, %v132_v13 }
  0xfd   :  { %v241_v15 = vpop.f32.mrf.mxu0 }
  0xfe   :  { %v138_v16 = vmax.f32 %v133_v14, 0.0 }
  0xff   :  { %v135_v17 = vpop.f32.mrf.mxu0 }
 0x100   :  { %v139_v18 = vpack.c.bf16 %v138_v16, %v138_v16 }
 0x101   :  { %v242_v19 = vpop.f32.mrf.mxu0 }
 0x102   :  { %248 = vmatmul.mubr.msk.bf16.vlgmr.msra.gmra.mxu1 %vm163_vm3, %v139_v18 }
 0x1c2   :  { %v201_v21 = vpop.f32.mrf.mxu1 }
 0x1c3   :  { %v202_v22 = vadd.f32 %v228_v20, %v201_v21 }
 0x1c4   :  { %v249_v23 = vpop.f32.mrf.mxu1 }
 0x1c5   :  { %207 = vst [vmem:[#allocation10] sm:$0xff] %v202_v22 }
 0x1c6   :  { %v204_v24 = vpop.f32.mrf.mxu1 }
 0x1c7   :  { %341 = shalt.err (!%p338_p5)
}
 0x1c8   :  { %217 = dma.vmem_to_hbm [thread:$0]  %s215_s20, 128, %s429_s6, [#allocation4]   ;;  %v250_v25 = vpop.f32.mrf.mxu1 }
 0x1c9   :  { %356 = dma.done.wait [#allocation4], 128  }
 0x1ca   :  { %357 = vsyncadd [#allocation4], 4294967168 }
 0x1cb   :  { %221 = vsyncpa [#allocation3], 1 }
 0x1cc   :  { %222 = vsyncpa [#allocation8], 1 }
 0x1cd   :  { %223 = vsyncpa [#allocation4], 1 }
 0x1ce   :  { %224 = vsyncpa [#allocation5], 1 }

</bundles_post_ra>
